<compile_context>
chip_gen: v5e
topology: v5e:2x2
jax: 0.10.0
libtpu: 0.0.40
codegen_flags: <defaults>
</compile_context>

<pallas_src>
import functools

import jax
import jax.numpy as jnp
import numpy as np
from jax.experimental import pallas as pl
from jax.experimental.pallas import tpu as pltpu

EPS = 1e-5  # nn.BatchNorm2d default eps


def _dsconv_kernel(N, C, H, W, x_ref, bmat_ref, prm_ref, o_ref):
    # x_ref   : (N*C, H*W)   input, row r = n*C + c, spatial on the lane axis
    # bmat_ref: (N*C, N*C)   block-diagonal pointwise-1x1 mixing matrix
    # prm_ref : (N*C, 13)    per-row params: cols 0..8 dw taps, 9..12 g1,b1,g2,b2
    # o_ref   : (N*C, H*W)
    NC, HW = x_ref.shape
    inv_cnt = 1.0 / float(N * H * W)

    x = x_ref[...]                       # (NC, HW)
    prm = prm_ref[...]                   # (NC, 13)

    # ---- in-kernel halo masks (no wrapper-side mask / wm9 materialization) ----
    pos = jax.lax.broadcasted_iota(jnp.int32, (NC, HW), 1)
    if (W & (W - 1)) == 0:
        hh = pos >> (W.bit_length() - 1)
        ww = pos & (W - 1)
    else:
        # TODO(synk): non-power-of-two W relies on vector i32 division lowering.
        hh = pos // W
        ww = pos - hh * W

    # ---- depthwise 3x3, padding=1, groups=C: 9 lane rolls + masked FMAs -------
    acc = x * prm[:, 4:5]                # centre tap (kh=1, kw=1)
    for kh in range(3):
        for kw in range(3):
            dh, dw = kh - 1, kw - 1
            if dh == 0 and dw == 0:
                continue
            k = kh * 3 + kw
            shift = (-(dh * W + dw)) % HW          # roll(x,s)[p] = x[p - s]
            shifted = pltpu.roll(x, shift, 1)      # XLU lane rotation
            valid = None
            if dh == -1:
                valid = hh >= 1
            elif dh == 1:
                valid = hh <= H - 2
            if dw == -1:
                c = ww >= 1
                valid = c if valid is None else jnp.logical_and(valid, c)
            elif dw == 1:
                c = ww <= W - 2
                valid = c if valid is None else jnp.logical_and(valid, c)
            acc = acc + jnp.where(valid, shifted * prm[:, k:k + 1], 0.0)

    # ---- training-mode BatchNorm2d, centered two-pass stats -------------------
    def batch_norm(t, gamma, beta):
        # per-channel stats over (N, H*W); rows of the same channel are C apart
        rs = jnp.sum(t, axis=1, keepdims=True)              # (NC,1) per-row sums
        cs = rs
        for i in range(1, N):
            cs = cs + pltpu.roll(rs, i * C, 0)              # combine images
        mean = cs * inv_cnt
        cent = t - mean
        rq = jnp.sum(cent * cent, axis=1, keepdims=True)
        cq = rq
        for i in range(1, N):
            cq = cq + pltpu.roll(rq, i * C, 0)
        var = cq * inv_cnt                                   # biased variance
        scale = gamma * jax.lax.rsqrt(var + EPS)
        return cent * scale + beta

    # ---- BN1 + ReLU ------------------------------------------------------------
    y = jnp.maximum(batch_norm(acc, prm[:, 9:10], prm[:, 10:11]), 0.0)

    # ---- pointwise 1x1 as block-diag (NC,NC)x(NC,HW) matmul (MXU, idle otherwise)
    z = jnp.dot(bmat_ref[...], y, preferred_element_type=jnp.float32)

    # ---- BN2 + lane/sublane-dense store ---------------------------------------
    o_ref[...] = batch_norm(z, prm[:, 11:12], prm[:, 12:13])


@jax.jit
def adaptive_ds_conv(x_nchw, dw_w, pw_w, g1, b1, g2, b2):
    """x_nchw: (N, C, H, W) float32, like the PyTorch module. Returns NCHW."""
    N, C, H, W = x_nchw.shape
    HW = H * W
    NC = N * C

    # NCHW -> (N*C, H*W): a contiguous, free reshape (no transpose, no pad pass).
    x2 = x_nchw.reshape(NC, HW).astype(jnp.float32)

    # One tiny per-row parameter table: cols 0..8 = depthwise taps (k = kh*3+kw),
    # cols 9..12 = g1, b1, g2, b2.  Row r corresponds to channel r % C.
    taps = dw_w[:, 0].reshape(C, 9).astype(jnp.float32)            # (C, 9)
    bn = jnp.stack([g1, b1, g2, b2], axis=1).astype(jnp.float32)   # (C, 4)
    prm = jnp.tile(jnp.concatenate([taps, bn], axis=1), (N, 1))    # (NC, 13)

    # Block-diagonal pointwise mixing matrix: z = B @ y with
    # B[n*C+co, n*C+ci] = pw_w[co, ci, 0, 0].
    pw2d = pw_w[:, :, 0, 0].astype(jnp.float32)                    # (Cout, Cin)
    bmat = jnp.kron(jnp.eye(N, dtype=jnp.float32), pw2d)           # (NC, NC)

    vmem = pl.BlockSpec(memory_space=pltpu.MemorySpace.VMEM)
    out2 = pl.pallas_call(
        functools.partial(_dsconv_kernel, N, C, H, W),
        out_shape=jax.ShapeDtypeStruct((NC, HW), jnp.float32),
        in_specs=[vmem, vmem, vmem],
        out_specs=vmem,
    )(x2, bmat, prm)

    return out2.reshape(N, C, H, W)   # free reshape back to NCHW


def _reference(x, dw_w, pw_w, g1, b1, g2, b2):
    """Pure-JAX reference of the PyTorch forward (training-mode BN)."""
    C = x.shape[1]
    y = jax.lax.conv_general_dilated(
        x, dw_w, window_strides=(1, 1), padding=((1, 1), (1, 1)),
        feature_group_count=C,
        dimension_numbers=("NCHW", "OIHW", "NCHW"))

    def bn(t, g, b):
        m = jnp.mean(t, axis=(0, 2, 3), keepdims=True)
        v = jnp.mean(jnp.square(t - m), axis=(0, 2, 3), keepdims=True)
        return (t - m) * jax.lax.rsqrt(v + EPS) * g.reshape(1, -1, 1, 1) \
            + b.reshape(1, -1, 1, 1)

    y = jnp.maximum(bn(y, g1, b1), 0.0)
    z = jax.lax.conv_general_dilated(
        y, pw_w, window_strides=(1, 1), padding="VALID",
        dimension_numbers=("NCHW", "OIHW", "NCHW"))
    return bn(z, g2, b2)


if __name__ == "__main__":
    key = jax.random.PRNGKey(0)
    kx, k1, k2, k3, k4, k5, k6 = jax.random.split(key, 7)

    N, C, H, W = 2, 4, 16, 16
    x = jax.random.normal(kx, (N, C, H, W), jnp.float32)

    # deterministic parameter init (shapes match the PyTorch module's __init__)
    dw_w = 0.3 * jax.random.normal(k1, (C, 1, 3, 3), jnp.float32)   # depthwise conv
    pw_w = 0.3 * jax.random.normal(k2, (C, C, 1, 1), jnp.float32)   # pointwise conv
    g1 = 1.0 + 0.1 * jax.random.normal(k3, (C,), jnp.float32)       # bn1 weight
    b1 = 0.1 * jax.random.normal(k4, (C,), jnp.float32)             # bn1 bias
    g2 = 1.0 + 0.1 * jax.random.normal(k5, (C,), jnp.float32)       # bn2 weight
    b2 = 0.1 * jax.random.normal(k6, (C,), jnp.float32)             # bn2 bias

    out = adaptive_ds_conv(x, dw_w, pw_w, g1, b1, g2, b2)
    out = jax.block_until_ready(out)

    ref = _reference(x, dw_w, pw_w, g1, b1, g2, b2)
    np.testing.assert_allclose(np.asarray(out), np.asarray(ref),
                               rtol=1e-4, atol=1e-4)
    print("KERNEL_OK")
</pallas_src>

<mosaic_0001>
module attributes {stable_mosaic.version = 11 : i64} {
  func.func @_dsconv_kernel(%arg0: memref<8x256xf32, #tpu.memory_space<vmem>>, %arg1: memref<8x8xf32, #tpu.memory_space<vmem>>, %arg2: memref<8x13xf32, #tpu.memory_space<vmem>>, %arg3: memref<8x256xf32, #tpu.memory_space<vmem>>) attributes {dimension_semantics = [], scalar_prefetch = 0 : i64, scratch_operands = 0 : i64, tpu.core_type = #tpu.core_type<tc>} {
    %c0 = arith.constant 0 : index
    %c0_0 = arith.constant 0 : index
    %0 = vector.load %arg0[%c0, %c0_0] : memref<8x256xf32, #tpu.memory_space<vmem>>, vector<8x256xf32>
    %c0_1 = arith.constant 0 : index
    %c0_2 = arith.constant 0 : index
    %1 = vector.load %arg2[%c0_1, %c0_2] : memref<8x13xf32, #tpu.memory_space<vmem>>, vector<8x13xf32>
    %2 = tpu.iota {dimensions = array<i32: 1>} : vector<8x256xi32>
    %c4_i32 = arith.constant 4 : i32
    %3 = vector.broadcast %c4_i32 : i32 to vector<8x256xi32>
    %4 = arith.shrsi %2, %3 : vector<8x256xi32>
    %c15_i32 = arith.constant 15 : i32
    %5 = vector.broadcast %c15_i32 : i32 to vector<8x256xi32>
    %6 = arith.andi %2, %5 : vector<8x256xi32>
    %7 = vector.extract_strided_slice %1 {offsets = [0, 4], sizes = [8, 1], strides = [1, 1]} : vector<8x13xf32> to vector<8x1xf32>
    %8 = vector.broadcast %7 : vector<8x1xf32> to vector<8x256xf32>
    %9 = arith.mulf %0, %8 : vector<8x256xf32>
    %c17_i32 = arith.constant 17 : i32
    %10 = tpu.dynamic_rotate %0 by %c17_i32 dim 1 : vector<8x256xf32>, i32 -> vector<8x256xf32>
    %c1_i32 = arith.constant 1 : i32
    %11 = vector.broadcast %c1_i32 : i32 to vector<8x256xi32>
    %12 = arith.cmpi sge, %4, %11 : vector<8x256xi32>
    %c1_i32_3 = arith.constant 1 : i32
    %13 = vector.broadcast %c1_i32_3 : i32 to vector<8x256xi32>
    %14 = arith.cmpi sge, %6, %13 : vector<8x256xi32>
    %15 = arith.andi %12, %14 : vector<8x256xi1>
    %16 = vector.extract_strided_slice %1 {offsets = [0, 0], sizes = [8, 1], strides = [1, 1]} : vector<8x13xf32> to vector<8x1xf32>
    %17 = vector.broadcast %16 : vector<8x1xf32> to vector<8x256xf32>
    %18 = arith.mulf %10, %17 : vector<8x256xf32>
    %cst = arith.constant 0.000000e+00 : f32
    %19 = vector.broadcast %cst : f32 to vector<8x256xf32>
    %20 = arith.select %15, %18, %19 : vector<8x256xi1>, vector<8x256xf32>
    %21 = arith.addf %9, %20 : vector<8x256xf32>
    %c16_i32 = arith.constant 16 : i32
    %22 = tpu.dynamic_rotate %0 by %c16_i32 dim 1 : vector<8x256xf32>, i32 -> vector<8x256xf32>
    %c1_i32_4 = arith.constant 1 : i32
    %23 = vector.broadcast %c1_i32_4 : i32 to vector<8x256xi32>
    %24 = arith.cmpi sge, %4, %23 : vector<8x256xi32>
    %25 = vector.extract_strided_slice %1 {offsets = [0, 1], sizes = [8, 1], strides = [1, 1]} : vector<8x13xf32> to vector<8x1xf32>
    %26 = vector.broadcast %25 : vector<8x1xf32> to vector<8x256xf32>
    %27 = arith.mulf %22, %26 : vector<8x256xf32>
    %cst_5 = arith.constant 0.000000e+00 : f32
    %28 = vector.broadcast %cst_5 : f32 to vector<8x256xf32>
    %29 = arith.select %24, %27, %28 : vector<8x256xi1>, vector<8x256xf32>
    %30 = arith.addf %21, %29 : vector<8x256xf32>
    %c15_i32_6 = arith.constant 15 : i32
    %31 = tpu.dynamic_rotate %0 by %c15_i32_6 dim 1 : vector<8x256xf32>, i32 -> vector<8x256xf32>
    %c1_i32_7 = arith.constant 1 : i32
    %32 = vector.broadcast %c1_i32_7 : i32 to vector<8x256xi32>
    %33 = arith.cmpi sge, %4, %32 : vector<8x256xi32>
    %c14_i32 = arith.constant 14 : i32
    %34 = vector.broadcast %c14_i32 : i32 to vector<8x256xi32>
    %35 = arith.cmpi sle, %6, %34 : vector<8x256xi32>
    %36 = arith.andi %33, %35 : vector<8x256xi1>
    %37 = vector.extract_strided_slice %1 {offsets = [0, 2], sizes = [8, 1], strides = [1, 1]} : vector<8x13xf32> to vector<8x1xf32>
    %38 = vector.broadcast %37 : vector<8x1xf32> to vector<8x256xf32>
    %39 = arith.mulf %31, %38 : vector<8x256xf32>
    %cst_8 = arith.constant 0.000000e+00 : f32
    %40 = vector.broadcast %cst_8 : f32 to vector<8x256xf32>
    %41 = arith.select %36, %39, %40 : vector<8x256xi1>, vector<8x256xf32>
    %42 = arith.addf %30, %41 : vector<8x256xf32>
    %c1_i32_9 = arith.constant 1 : i32
    %43 = tpu.dynamic_rotate %0 by %c1_i32_9 dim 1 : vector<8x256xf32>, i32 -> vector<8x256xf32>
    %c1_i32_10 = arith.constant 1 : i32
    %44 = vector.broadcast %c1_i32_10 : i32 to vector<8x256xi32>
    %45 = arith.cmpi sge, %6, %44 : vector<8x256xi32>
    %46 = vector.extract_strided_slice %1 {offsets = [0, 3], sizes = [8, 1], strides = [1, 1]} : vector<8x13xf32> to vector<8x1xf32>
    %47 = vector.broadcast %46 : vector<8x1xf32> to vector<8x256xf32>
    %48 = arith.mulf %43, %47 : vector<8x256xf32>
    %cst_11 = arith.constant 0.000000e+00 : f32
    %49 = vector.broadcast %cst_11 : f32 to vector<8x256xf32>
    %50 = arith.select %45, %48, %49 : vector<8x256xi1>, vector<8x256xf32>
    %51 = arith.addf %42, %50 : vector<8x256xf32>
    %c255_i32 = arith.constant 255 : i32
    %52 = tpu.dynamic_rotate %0 by %c255_i32 dim 1 : vector<8x256xf32>, i32 -> vector<8x256xf32>
    %c14_i32_12 = arith.constant 14 : i32
    %53 = vector.broadcast %c14_i32_12 : i32 to vector<8x256xi32>
    %54 = arith.cmpi sle, %6, %53 : vector<8x256xi32>
    %55 = vector.extract_strided_slice %1 {offsets = [0, 5], sizes = [8, 1], strides = [1, 1]} : vector<8x13xf32> to vector<8x1xf32>
    %56 = vector.broadcast %55 : vector<8x1xf32> to vector<8x256xf32>
    %57 = arith.mulf %52, %56 : vector<8x256xf32>
    %cst_13 = arith.constant 0.000000e+00 : f32
    %58 = vector.broadcast %cst_13 : f32 to vector<8x256xf32>
    %59 = arith.select %54, %57, %58 : vector<8x256xi1>, vector<8x256xf32>
    %60 = arith.addf %51, %59 : vector<8x256xf32>
    %c241_i32 = arith.constant 241 : i32
    %61 = tpu.dynamic_rotate %0 by %c241_i32 dim 1 : vector<8x256xf32>, i32 -> vector<8x256xf32>
    %c14_i32_14 = arith.constant 14 : i32
    %62 = vector.broadcast %c14_i32_14 : i32 to vector<8x256xi32>
    %63 = arith.cmpi sle, %4, %62 : vector<8x256xi32>
    %c1_i32_15 = arith.constant 1 : i32
    %64 = vector.broadcast %c1_i32_15 : i32 to vector<8x256xi32>
    %65 = arith.cmpi sge, %6, %64 : vector<8x256xi32>
    %66 = arith.andi %63, %65 : vector<8x256xi1>
    %67 = vector.extract_strided_slice %1 {offsets = [0, 6], sizes = [8, 1], strides = [1, 1]} : vector<8x13xf32> to vector<8x1xf32>
    %68 = vector.broadcast %67 : vector<8x1xf32> to vector<8x256xf32>
    %69 = arith.mulf %61, %68 : vector<8x256xf32>
    %cst_16 = arith.constant 0.000000e+00 : f32
    %70 = vector.broadcast %cst_16 : f32 to vector<8x256xf32>
    %71 = arith.select %66, %69, %70 : vector<8x256xi1>, vector<8x256xf32>
    %72 = arith.addf %60, %71 : vector<8x256xf32>
    %c240_i32 = arith.constant 240 : i32
    %73 = tpu.dynamic_rotate %0 by %c240_i32 dim 1 : vector<8x256xf32>, i32 -> vector<8x256xf32>
    %c14_i32_17 = arith.constant 14 : i32
    %74 = vector.broadcast %c14_i32_17 : i32 to vector<8x256xi32>
    %75 = arith.cmpi sle, %4, %74 : vector<8x256xi32>
    %76 = vector.extract_strided_slice %1 {offsets = [0, 7], sizes = [8, 1], strides = [1, 1]} : vector<8x13xf32> to vector<8x1xf32>
    %77 = vector.broadcast %76 : vector<8x1xf32> to vector<8x256xf32>
    %78 = arith.mulf %73, %77 : vector<8x256xf32>
    %cst_18 = arith.constant 0.000000e+00 : f32
    %79 = vector.broadcast %cst_18 : f32 to vector<8x256xf32>
    %80 = arith.select %75, %78, %79 : vector<8x256xi1>, vector<8x256xf32>
    %81 = arith.addf %72, %80 : vector<8x256xf32>
    %c239_i32 = arith.constant 239 : i32
    %82 = tpu.dynamic_rotate %0 by %c239_i32 dim 1 : vector<8x256xf32>, i32 -> vector<8x256xf32>
    %c14_i32_19 = arith.constant 14 : i32
    %83 = vector.broadcast %c14_i32_19 : i32 to vector<8x256xi32>
    %84 = arith.cmpi sle, %4, %83 : vector<8x256xi32>
    %c14_i32_20 = arith.constant 14 : i32
    %85 = vector.broadcast %c14_i32_20 : i32 to vector<8x256xi32>
    %86 = arith.cmpi sle, %6, %85 : vector<8x256xi32>
    %87 = arith.andi %84, %86 : vector<8x256xi1>
    %88 = vector.extract_strided_slice %1 {offsets = [0, 8], sizes = [8, 1], strides = [1, 1]} : vector<8x13xf32> to vector<8x1xf32>
    %89 = vector.broadcast %88 : vector<8x1xf32> to vector<8x256xf32>
    %90 = arith.mulf %82, %89 : vector<8x256xf32>
    %cst_21 = arith.constant 0.000000e+00 : f32
    %91 = vector.broadcast %cst_21 : f32 to vector<8x256xf32>
    %92 = arith.select %87, %90, %91 : vector<8x256xi1>, vector<8x256xf32>
    %93 = arith.addf %81, %92 : vector<8x256xf32>
    %94 = vector.extract_strided_slice %1 {offsets = [0, 9], sizes = [8, 1], strides = [1, 1]} : vector<8x13xf32> to vector<8x1xf32>
    %95 = vector.extract_strided_slice %1 {offsets = [0, 10], sizes = [8, 1], strides = [1, 1]} : vector<8x13xf32> to vector<8x1xf32>
    %cst_22 = arith.constant dense<0.000000e+00> : vector<8xf32>
    %96 = vector.multi_reduction <add>, %93, %cst_22 [1] : vector<8x256xf32> to vector<8xf32>
    %97 = vector.shape_cast %96 : vector<8xf32> to vector<8x1xf32>
    %c4_i32_23 = arith.constant 4 : i32
    %98 = tpu.dynamic_rotate %97 by %c4_i32_23 dim 0 : vector<8x1xf32>, i32 -> vector<8x1xf32>
    %99 = arith.addf %97, %98 : vector<8x1xf32>
    %cst_24 = arith.constant 0.001953125 : f32
    %100 = vector.broadcast %cst_24 : f32 to vector<8x1xf32>
    %101 = arith.mulf %99, %100 : vector<8x1xf32>
    %102 = vector.broadcast %101 : vector<8x1xf32> to vector<8x256xf32>
    %103 = arith.subf %93, %102 : vector<8x256xf32>
    %104 = arith.mulf %103, %103 : vector<8x256xf32>
    %cst_25 = arith.constant dense<0.000000e+00> : vector<8xf32>
    %105 = vector.multi_reduction <add>, %104, %cst_25 [1] : vector<8x256xf32> to vector<8xf32>
    %106 = vector.shape_cast %105 : vector<8xf32> to vector<8x1xf32>
    %c4_i32_26 = arith.constant 4 : i32
    %107 = tpu.dynamic_rotate %106 by %c4_i32_26 dim 0 : vector<8x1xf32>, i32 -> vector<8x1xf32>
    %108 = arith.addf %106, %107 : vector<8x1xf32>
    %cst_27 = arith.constant 0.001953125 : f32
    %109 = vector.broadcast %cst_27 : f32 to vector<8x1xf32>
    %110 = arith.mulf %108, %109 : vector<8x1xf32>
    %cst_28 = arith.constant 9.99999974E-6 : f32
    %111 = vector.broadcast %cst_28 : f32 to vector<8x1xf32>
    %112 = arith.addf %110, %111 : vector<8x1xf32>
    %113 = math.rsqrt %112 : vector<8x1xf32>
    %114 = arith.mulf %94, %113 : vector<8x1xf32>
    %115 = vector.broadcast %114 : vector<8x1xf32> to vector<8x256xf32>
    %116 = arith.mulf %103, %115 : vector<8x256xf32>
    %117 = vector.broadcast %95 : vector<8x1xf32> to vector<8x256xf32>
    %118 = arith.addf %116, %117 : vector<8x256xf32>
    %cst_29 = arith.constant 0.000000e+00 : f32
    %119 = vector.broadcast %cst_29 : f32 to vector<8x256xf32>
    %120 = arith.maximumf %118, %119 : vector<8x256xf32>
    %c0_30 = arith.constant 0 : index
    %c0_31 = arith.constant 0 : index
    %121 = vector.load %arg1[%c0_30, %c0_31] : memref<8x8xf32, #tpu.memory_space<vmem>>, vector<8x8xf32>
    %cst_32 = arith.constant dense<0.000000e+00> : vector<8x256xf32>
    %122 = tpu.matmul %121, %120, %cst_32 {dimension_numbers = #tpu.dot_dimension_numbers<[1], [0], [0], [1], [0, 0, 1, 1], [], []>} : vector<8x8xf32>, vector<8x256xf32>, vector<8x256xf32> -> vector<8x256xf32>
    %123 = vector.extract_strided_slice %1 {offsets = [0, 11], sizes = [8, 1], strides = [1, 1]} : vector<8x13xf32> to vector<8x1xf32>
    %124 = vector.extract_strided_slice %1 {offsets = [0, 12], sizes = [8, 1], strides = [1, 1]} : vector<8x13xf32> to vector<8x1xf32>
    %cst_33 = arith.constant dense<0.000000e+00> : vector<8xf32>
    %125 = vector.multi_reduction <add>, %122, %cst_33 [1] : vector<8x256xf32> to vector<8xf32>
    %126 = vector.shape_cast %125 : vector<8xf32> to vector<8x1xf32>
    %c4_i32_34 = arith.constant 4 : i32
    %127 = tpu.dynamic_rotate %126 by %c4_i32_34 dim 0 : vector<8x1xf32>, i32 -> vector<8x1xf32>
    %128 = arith.addf %126, %127 : vector<8x1xf32>
    %cst_35 = arith.constant 0.001953125 : f32
    %129 = vector.broadcast %cst_35 : f32 to vector<8x1xf32>
    %130 = arith.mulf %128, %129 : vector<8x1xf32>
    %131 = vector.broadcast %130 : vector<8x1xf32> to vector<8x256xf32>
    %132 = arith.subf %122, %131 : vector<8x256xf32>
    %133 = arith.mulf %132, %132 : vector<8x256xf32>
    %cst_36 = arith.constant dense<0.000000e+00> : vector<8xf32>
    %134 = vector.multi_reduction <add>, %133, %cst_36 [1] : vector<8x256xf32> to vector<8xf32>
    %135 = vector.shape_cast %134 : vector<8xf32> to vector<8x1xf32>
    %c4_i32_37 = arith.constant 4 : i32
    %136 = tpu.dynamic_rotate %135 by %c4_i32_37 dim 0 : vector<8x1xf32>, i32 -> vector<8x1xf32>
    %137 = arith.addf %135, %136 : vector<8x1xf32>
    %cst_38 = arith.constant 0.001953125 : f32
    %138 = vector.broadcast %cst_38 : f32 to vector<8x1xf32>
    %139 = arith.mulf %137, %138 : vector<8x1xf32>
    %cst_39 = arith.constant 9.99999974E-6 : f32
    %140 = vector.broadcast %cst_39 : f32 to vector<8x1xf32>
    %141 = arith.addf %139, %140 : vector<8x1xf32>
    %142 = math.rsqrt %141 : vector<8x1xf32>
    %143 = arith.mulf %123, %142 : vector<8x1xf32>
    %144 = vector.broadcast %143 : vector<8x1xf32> to vector<8x256xf32>
    %145 = arith.mulf %132, %144 : vector<8x256xf32>
    %146 = vector.broadcast %124 : vector<8x1xf32> to vector<8x256xf32>
    %147 = arith.addf %145, %146 : vector<8x256xf32>
    %c0_40 = arith.constant 0 : index
    %c0_41 = arith.constant 0 : index
    %148 = vector.load %arg3[%c0_40, %c0_41] : memref<8x256xf32, #tpu.memory_space<vmem>>, vector<8x256xf32>
    tpu.vector_store %arg3[%c0_40, %c0_41], %147 {strides = array<i32>} : memref<8x256xf32, #tpu.memory_space<vmem>>, vector<8x256xf32>,
    return
  }
}

</mosaic_0001>

<bundles_post_ra>
// kernel: adaptive_ds_conv.1
= control target key start
LH: loop header
LB: loop body
LE: loop exit
PB: predicated region body
PF: predicated region fallthrough
CT: control target
= control target key end

     0   :  { %v380_v0 = vmov 0   ;;  %v381_v3 = vmov 1   ;;  %s382_s16 = smov 17   ;;  %s383_s17 = smov 16   ;;  %v384_v5 = vmov 4   ;;  %v386_v6 = vmov 2   ;;  %s584_s2 = inlined_call_operand.vmem [shape: f32[8,13], index: 2, kind: input, shape index: {}]   ;;  %s585_s0 = inlined_call_operand.vmem [shape: f32[8,256], index: 0, kind: input, shape index: {}]   ;;  %s586_s1 = inlined_call_operand.vmem [shape: f32[8,8], index: 1, kind: input, shape index: {}]   ;;  %s587_s3 = inlined_call_operand.vmem [shape: f32[8,256], index: 3, kind: output, shape index: {}]  }
   0x1   :  { %361 = vset.pattern.permute.xlu1 %v380_v0  ;;  %v426_v1 = vld [vmem:[%s584_s2] sm:$0xff]  ;;  %363 = vset.pattern.permute.xlu0 %v381_v3  ;;  %v439_v4 = vld [vmem:[%s585_s0 + $0x8] sm:$0xff]  ;;  %s385_s2 = smov 15   ;;  %s387_s20 = smov 1   ;;  %v389_v7 = vmov 3   ;;  %v391_v8 = vmov 5   ;;  %v17_v24 = vlaneseq }
   0x2   :  { %v431_v2 = vld [vmem:[%s585_s0] sm:$0xff]  ;;  %45 = vperm.xlu1 %361, %v426_v1   ;;  %s388_s0 = smov 127   ;;  %s390_s21 = smov 113   ;;  %v393_v9 = vmov 6   ;;  %v395_v10 = vmov 7   ;;  %v396_v11 = vmov 8  }
   0x3   :  { %31 = vrot.lane.b32.xlu0 %v431_v2, %s382_s16  ;;  %54 = vrot.lane.b32.xlu2 %v431_v2, %s383_s17  ;;  %s392_s22 = smov 112   ;;  %s394_s23 = smov 111   ;;  %v463_v28 = vand.u32 127, %v17_v24 }
   0x4   :  { %s397_s24 = smov 9  }
   0x5   :  { %v19_v29 = vadd.s32 128, %v463_v28  ;;  %vm35_vm0 = vcmp.lt.s32.totalorder %v463_v28, 17  ;;  %v20_v31 = vshra.s32 %v463_v28, 4  ;;  %v22_v32 = vand.u32 15, %v463_v28 }
   0x6   :  { %vm58_vm5 = vcmp.lt.s32.totalorder %v463_v28, 16  ;;  %vm75_vm8 = vcmp.lt.s32.totalorder %v463_v28, 15  ;;  %vm96_vm9 = vcmp.lt.s32.totalorder %v463_v28, 1  ;;  %vm113_vm12 = vcmp.lt.s32.totalorder %v463_v28, 127 }
   0x7   :  { %v21_v33 = vshra.s32 %v19_v29, 4  ;;  %v23_v34 = vand.u32 15, %v19_v29  ;;  %vm469_vm1 = vcmp.ge.s32.totalorder %v20_v31, 1  ;;  %vm473_vm2 = vcmp.ge.s32.totalorder %v22_v32, 1 }
   0x8   :  { %vm42_vm6 = vmand %vm469_vm1, %vm473_vm2  ;;  %vm498_vm10 = vcmp.le.s32.totalorder %v22_v32, 14  ;;  %vm130_vm14 = vcmp.lt.s32.totalorder %v463_v28, 113 }
   0x9   :  { %vm477_vm3 = vcmp.ge.s32.totalorder %v21_v33, 1  ;;  %vm481_vm4 = vcmp.ge.s32.totalorder %v23_v34, 1  ;;  %vm502_vm11 = vcmp.le.s32.totalorder %v23_v34, 14  ;;  %vm80_vm13 = vmand %vm469_vm1, %vm498_vm10 }
   0xa   :  { %362 = vset.pattern.permute.xlu1 %v384_v5  ;;  %vm43_vm7 = vmand %vm477_vm3, %vm481_vm4 }
   0xb   :  { %33 = vrot.lane.b32.xlu0 %v439_v4, %s382_s16  ;;  %26 = vperm.xlu1 %362, %v426_v1   ;;  %vm81_vm15 = vmand %vm477_vm3, %vm502_vm11 }
   0xc   :  { %56 = vrot.lane.b32.xlu2 %v439_v4, %s383_s17 }
  0x13   :  { %62 = vperm.xlu0 %363, %v426_v1   ;;  %71 = vrot.lane.b32.xlu1 %v431_v2, %s385_s2 }
  0x14   :  { %73 = vrot.lane.b32.xlu2 %v439_v4, %s385_s2  ;;  %364 = vset.pattern.permute.xlu1 %v386_v6 }
  0x1b   :  { %94 = vrot.lane.b32.xlu0 %v439_v4, %s387_s20  ;;  %83 = vperm.xlu1 %364, %v426_v1  }
  0x1c   :  { %92 = vrot.lane.b32.xlu2 %v431_v2, %s387_s20  ;;  %370 = vset.pattern.permute.xlu0 %v380_v0 }
  0x23   :  { %111 = vrot.lane.b32.xlu0 %v439_v4, %s388_s0  ;;  %365 = vset.pattern.permute.xlu1 %v389_v7 }
  0x24   :  { %109 = vrot.lane.b32.xlu2 %v431_v2, %s388_s0  ;;  %100 = vperm.xlu1 %365, %v426_v1  }
  0x2b   :  { %128 = vrot.lane.b32.xlu0 %v439_v4, %s390_s21 }
  0x2c   :  { %126 = vrot.lane.b32.xlu2 %v431_v2, %s390_s21  ;;  %366 = vset.pattern.permute.xlu1 %v391_v8 }
  0x2d   :  { %117 = vperm.xlu1 %366, %v426_v1  }
  0x33   :  { %149 = vrot.lane.b32.xlu0 %v439_v4, %s392_s22 }
  0x34   :  { %147 = vrot.lane.b32.xlu2 %v431_v2, %s392_s22 }
  0x35   :  { %367 = vset.pattern.permute.xlu1 %v393_v9 }
  0x36   :  { %138 = vperm.xlu1 %367, %v426_v1  }
  0x3b   :  { %166 = vrot.lane.b32.xlu0 %v439_v4, %s394_s23 }
  0x3c   :  { %164 = vrot.lane.b32.xlu2 %v431_v2, %s394_s23 }
  0x3e   :  { %368 = vset.pattern.permute.xlu1 %v395_v10 }
  0x3f   :  { %155 = vperm.xlu1 %368, %v426_v1  }
  0x47   :  { %369 = vset.pattern.permute.xlu1 %v396_v11 }
  0x48   :  { %174 = vperm.xlu1 %369, %v426_v1  }
  0x50   :  { %373 = vset.pattern.permute.xlu1 %v380_v0 }
  0x5d   :  { %v55_v12 = vpop.permute.xlu2 %54 }
  0x66   :  { %v57_v15 = vpop.permute.xlu2 %56 }
  0x67   :  { %v59_v47 = vsel %vm58_vm5, %v55_v12, %v57_v15  ;;  %v60_v48 = vsel %vm58_vm5, %v57_v15, %v55_v12  ;;  %vm529_vm5 = vcmp.le.s32.totalorder %v20_v31, 14 }
  0x6e   :  { %v74_v18 = vpop.permute.xlu2 %73 }
  0x74   :  { %v46_v13 = vpop.permute.xlu1 %45 }
  0x75   :  { %v32_v14 = vpop.permute.xlu0 %31 }
  0x76   :  { %v93_v21 = vpop.permute.xlu2 %92 }
  0x7d   :  { %v34_v16 = vpop.permute.xlu0 %33  ;;  %v27_v17 = vpop.permute.xlu1 %26 }
  0x7e   :  { %v110_v26 = vpop.permute.xlu2 %109  ;;  %v37_v37 = vsel %vm35_vm0, %v34_v16, %v32_v14  ;;  %v36_v38 = vsel %vm35_vm0, %v32_v14, %v34_v16  ;;  %v29_v46 = vmul.f32 %v27_v17, %v431_v2  ;;  %v30_v49 = vmul.f32 %v27_v17, %v439_v4 }
  0x7f   :  { %v48_v43 = vmul.f32 %v46_v13, %v37_v37  ;;  %v49_v44 = vmul.f32 %v46_v13, %v36_v38  ;;  %vm151_vm0 = vcmp.lt.s32.totalorder %v463_v28, 112 }
  0x81   :  { %v50_v50 = vsel %vm42_vm6, %v48_v43, 0.0  ;;  %v51_v53 = vsel %vm43_vm7, %v49_v44, 0.0  ;;  %vm533_vm6 = vcmp.le.s32.totalorder %v21_v33, 14  ;;  %vm168_vm7 = vcmp.lt.s32.totalorder %v463_v28, 111 }
  0x82   :  { %v52_v62 = vadd.f32 %v50_v50, %v29_v46  ;;  %v53_v2 = vadd.f32 %v51_v53, %v30_v49 }
  0x85   :  { %v63_v19 = vpop.permute.xlu0 %62  ;;  %v72_v20 = vpop.permute.xlu1 %71 }
  0x86   :  { %v127_v35 = vpop.permute.xlu2 %126  ;;  %v65_v51 = vmul.f32 %v63_v19, %v60_v48  ;;  %v66_v54 = vmul.f32 %v63_v19, %v59_v47  ;;  %v76_v58 = vsel %vm75_vm8, %v72_v20, %v74_v18  ;;  %v77_v59 = vsel %vm75_vm8, %v74_v18, %v72_v20 }
  0x88   :  { %v67_v3 = vsel %vm469_vm1, %v65_v51, 0.0  ;;  %v68_v6 = vsel %vm477_vm3, %v66_v54, 0.0  ;;  %vm135_vm1 = vmand %vm529_vm5, %vm473_vm2 }
  0x89   :  { %v69_v18 = vadd.f32 %v67_v3, %v52_v62  ;;  %v70_v19 = vadd.f32 %v68_v6, %v53_v2  ;;  %vm136_vm3 = vmand %vm533_vm6, %vm481_vm4 }
  0x8d   :  { %v84_v22 = vpop.permute.xlu1 %83  ;;  %v95_v23 = vpop.permute.xlu0 %94 }
  0x8e   :  { %v148_v56 = vpop.permute.xlu2 %147  ;;  %v97_v60 = vsel %vm96_vm9, %v93_v21, %v95_v23  ;;  %v98_v61 = vsel %vm96_vm9, %v95_v23, %v93_v21  ;;  %v86_v63 = vmul.f32 %v84_v22, %v77_v59  ;;  %v87_v0 = vmul.f32 %v84_v22, %v76_v58 }
  0x90   :  { %v88_v13 = vsel %vm80_vm13, %v86_v63, 0.0  ;;  %v89_v14 = vsel %vm81_vm15, %v87_v0, 0.0 }
  0x95   :  { %v112_v27 = vpop.permute.xlu0 %111 }
  0x96   :  { %v101_v25 = vpop.permute.xlu1 %100  ;;  %v114_v4 = vsel %vm113_vm12, %v110_v26, %v112_v27  ;;  %v115_v5 = vsel %vm113_vm12, %v112_v27, %v110_v26  ;;  %v90_v26 = vadd.f32 %v88_v13, %v69_v18  ;;  %v91_v27 = vadd.f32 %v89_v14, %v70_v19  ;;  %v165_v33 = vpop.permute.xlu2 %164 }
  0x97   :  { %v103_v7 = vmul.f32 %v101_v25, %v98_v61  ;;  %v104_v8 = vmul.f32 %v101_v25, %v97_v60 }
  0x99   :  { %v105_v22 = vsel %vm473_vm2, %v103_v7, 0.0  ;;  %v106_v23 = vsel %vm481_vm4, %v104_v8, 0.0  ;;  %vm171_vm2 = vmand %vm529_vm5, %vm498_vm10 }
  0x9a   :  { %vm172_vm4 = vmand %vm533_vm6, %vm502_vm11 }
  0x9d   :  { %v129_v36 = vpop.permute.xlu0 %128 }
  0x9e   :  { %v131_v9 = vsel %vm130_vm14, %v127_v35, %v129_v36  ;;  %v132_v10 = vsel %vm130_vm14, %v129_v36, %v127_v35  ;;  %v107_v35 = vadd.f32 %v105_v22, %v90_v26  ;;  %v108_v36 = vadd.f32 %v106_v23, %v91_v27  ;;  %v235_v27 = vld [vmem:[%s586_s1] sm:$0xff]  ;;  %s400_s1 = smov 11  }
  0x9f   :  { %v118_v30 = vpop.permute.xlu1 %117 }
  0xa0   :  { %v120_v15 = vmul.f32 %v118_v30, %v114_v4  ;;  %v121_v16 = vmul.f32 %v118_v30, %v115_v5 }
  0xa2   :  { %v122_v29 = vsel %vm498_vm10, %v120_v15, 0.0  ;;  %v123_v30 = vsel %vm502_vm11, %v121_v16, 0.0  ;;  %v398_v15 = vmov 9   ;;  %v399_v16 = vmov 10  }
  0xa3   :  { %v124_v39 = vadd.f32 %v122_v29, %v107_v35  ;;  %v125_v40 = vadd.f32 %v123_v30, %v108_v36  ;;  %372 = vset.pattern.permute.xlu2 %v399_v16  ;;  %vm236_vm11 = vcmask 64512  }
  0xa5   :  { %v150_v57 = vpop.permute.xlu0 %149 }
  0xa6   :  { %v152_v20 = vsel %vm151_vm0, %v148_v56, %v150_v57  ;;  %v153_v21 = vsel %vm151_vm0, %v150_v57, %v148_v56 }
  0xa8   :  { %v139_v45 = vpop.permute.xlu1 %138 }
  0xa9   :  { %v141_v24 = vmul.f32 %v139_v45, %v131_v9  ;;  %v142_v25 = vmul.f32 %v139_v45, %v132_v10 }
  0xab   :  { %v143_v37 = vsel %vm135_vm1, %v141_v24, 0.0  ;;  %v144_v38 = vsel %vm136_vm3, %v142_v25, 0.0 }
  0xac   :  { %v145_v44 = vadd.f32 %v143_v37, %v124_v39  ;;  %v146_v45 = vadd.f32 %v144_v38, %v125_v40 }
  0xad   :  { %v167_v34 = vpop.permute.xlu0 %166 }
  0xae   :  { %v169_v41 = vsel %vm168_vm7, %v165_v33, %v167_v34  ;;  %v170_v42 = vsel %vm168_vm7, %v167_v34, %v165_v33 }
  0xb1   :  { %v156_v17 = vpop.permute.xlu1 %155 }
  0xb2   :  { %v158_v31 = vmul.f32 %v156_v17, %v152_v20  ;;  %v159_v32 = vmul.f32 %v156_v17, %v153_v21 }
  0xb4   :  { %v160_v28 = vsel %vm529_vm5, %v158_v31, 0.0  ;;  %v161_v43 = vsel %vm533_vm6, %v159_v32, 0.0 }
  0xb5   :  { %v162_v49 = vadd.f32 %v160_v28, %v145_v44  ;;  %v163_v50 = vadd.f32 %v161_v43, %v146_v45 }
  0xba   :  { %v175_v46 = vpop.permute.xlu1 %174 }
  0xbb   :  { %v177_v47 = vmul.f32 %v175_v46, %v169_v41  ;;  %v178_v48 = vmul.f32 %v175_v46, %v170_v42 }
  0xbd   :  { %v179_v51 = vsel %vm171_vm2, %v177_v47, 0.0  ;;  %v180_v53 = vsel %vm172_vm4, %v178_v48, 0.0 }
  0xbe   :  { %v181_v54 = vadd.f32 %v179_v51, %v162_v49  ;;  %v182_v56 = vadd.f32 %v180_v53, %v163_v50 }
  0xc0   :  { %v183_v52 = vadd.f32 %v182_v56, %v181_v54 }
  0xc2   :  { %184 = vadd.xlane.f32.xlu2 %v183_v52 }
  0xda   :  { %228 = vperm.xlu2 %372, %v426_v1  }
 0x135   :  { %v185_v57 = vpop.xlane.xlu2 %184 }
 0x136   :  { %v186_v58 = vrot.slane %v185_v57, 4 }
 0x138   :  { %v187_v59 = vadd.f32 %v186_v58, %v185_v57 }
 0x13a   :  { %v188_v60 = vmul.f32 0.001953125, %v187_v59 }
 0x13c   :  { %191 = vperm.xlu0 %370, %v188_v60  }
 0x13d   :  { %v229_v20 = vpop.permute.xlu2 %228 }
 0x144   :  { %371 = vset.pattern.permute.xlu0 %v398_v15 }
 0x1ae   :  { %v192_v55 = vpop.permute.xlu0 %191 }
 0x1af   :  { %v194_v61 = vsub.f32 %v181_v54, %v192_v55  ;;  %v195_v62 = vsub.f32 %v182_v56, %v192_v55  ;;  %v401_v54 = vmov 11   ;;  %v402_v56 = vmov 12  }
 0x1b1   :  { %v196_v63 = vmul.f32 %v194_v61, %v194_v61  ;;  %v197_v0 = vmul.f32 %v195_v62, %v195_v62 }
 0x1b3   :  { %v198_v2 = vadd.f32 %v197_v0, %v196_v63 }
 0x1b5   :  { %199 = vadd.xlane.f32.xlu1 %v198_v2 }
 0x228   :  { %v200_v3 = vpop.xlane.xlu1 %199 }
 0x229   :  { %v201_v4 = vrot.slane %v200_v3, 4 }
 0x22b   :  { %v202_v5 = vadd.f32 %v201_v4, %v200_v3 }
 0x22d   :  { %v203_v6 = vmul.f32 0.001953125, %v202_v5 }
 0x22f   :  { %v204_v7 = vadd.f32 1e-05, %v203_v6 }
 0x231   :  { %376 = vrsqrt.f32 %v204_v7  ;;  %vm211_vm9 = vweird.f32 %v204_v7 }
 0x237   :  { %v377_v8 = vpop.eup %376 }
 0x238   :  { %v206_v9 = vmul.f32 %v377_v8, %v204_v7  ;;  %vm212_vm8 = vweird.f32 %v377_v8 }
 0x239   :  { %vm213_vm10 = vmor %vm211_vm9, %vm212_vm8 }
 0x23a   :  { %v207_v10 = vmul.f32 %v377_v8, %v206_v9 }
 0x23c   :  { %v208_v11 = vmul.f32 0.5, %v207_v10 }
 0x23e   :  { %v209_v12 = vsub.f32 1.5, %v208_v11 }
 0x240   :  { %v210_v13 = vmul.f32 %v377_v8, %v209_v12 }
 0x242   :  { %v214_v14 = vsel %vm213_vm10, %v377_v8, %v210_v13 }
 0x243   :  { %216 = vrot.lane.b32.xlu0 %v214_v14, %s397_s24 }
 0x2b5   :  { %v217_v17 = vpop.permute.xlu0 %216 }
 0x2b6   :  { %v219_v18 = vmul.f32 %v217_v17, %v426_v1 }
 0x2b8   :  { %222 = vperm.xlu0 %371, %v219_v18  }
 0x2c0   :  { %375 = vset.pattern.permute.xlu0 %v402_v56 }
 0x32a   :  { %v223_v19 = vpop.permute.xlu0 %222 }
 0x32b   :  { %v225_v21 = vmul.f32 %v223_v19, %v194_v61  ;;  %v226_v22 = vmul.f32 %v223_v19, %v195_v62 }
 0x32d   :  { %v231_v23 = vadd.f32 %v229_v20, %v225_v21  ;;  %v232_v24 = vadd.f32 %v229_v20, %v226_v22 }
 0x32f   :  { %v233_v25 = vmax.f32 %v231_v23, 0.0  ;;  %v234_v26 = vmax.f32 %v232_v24, 0.0 }
 0x331   :  { %255 = vmatpush.msra.mxu0 %v233_v25  ;;  %275 = vmatpush.msra.mxu1 %v234_v26 }
 0x332   :  { %336 = vmatmul.msk.f32.vlgmr.msra.gmra.mxu0 %vm236_vm11, %v235_v27  ;;  %337 = vmatmul.msk.f32.vlgmr.msra.gmra.mxu1 %vm236_vm11, %v235_v27 }
 0x3af   :  { %v257_v29 = vpop.f32.mrf.mxu0  ;;  %v277_v30 = vpop.f32.mrf.mxu1 }
 0x3b0   :  { %v280_v31 = vadd.f32 %v277_v30, %v257_v29 }
 0x3b2   :  { %281 = vadd.xlane.f32.xlu0 %v280_v31 }
 0x3c6   :  { %325 = vperm.xlu0 %375, %v426_v1  }
 0x425   :  { %v282_v32 = vpop.xlane.xlu0 %281 }
 0x426   :  { %v283_v33 = vrot.slane %v282_v32, 4 }
 0x428   :  { %v284_v34 = vadd.f32 %v283_v33, %v282_v32 }
 0x42a   :  { %v285_v35 = vmul.f32 0.001953125, %v284_v34 }
 0x42c   :  { %288 = vperm.xlu1 %373, %v285_v35  }
 0x434   :  { %374 = vset.pattern.permute.xlu1 %v401_v54 }
 0x438   :  { %v326_v59 = vpop.permute.xlu0 %325 }
 0x49e   :  { %v289_v36 = vpop.permute.xlu1 %288 }
 0x49f   :  { %v291_v37 = vsub.f32 %v257_v29, %v289_v36  ;;  %v292_v38 = vsub.f32 %v277_v30, %v289_v36 }
 0x4a1   :  { %v293_v39 = vmul.f32 %v291_v37, %v291_v37  ;;  %v294_v40 = vmul.f32 %v292_v38, %v292_v38 }
 0x4a3   :  { %v295_v41 = vadd.f32 %v294_v40, %v293_v39 }
 0x4a5   :  { %296 = vadd.xlane.f32.xlu2 %v295_v41 }
 0x518   :  { %v297_v42 = vpop.xlane.xlu2 %296 }
 0x519   :  { %v298_v28 = vrot.slane %v297_v42, 4 }
 0x51b   :  { %v299_v43 = vadd.f32 %v298_v28, %v297_v42 }
 0x51d   :  { %v300_v44 = vmul.f32 0.001953125, %v299_v43 }
 0x51f   :  { %v301_v45 = vadd.f32 1e-05, %v300_v44 }
 0x521   :  { %378 = vrsqrt.f32 %v301_v45  ;;  %vm308_vm13 = vweird.f32 %v301_v45 }
 0x527   :  { %v379_v46 = vpop.eup %378 }
 0x528   :  { %v303_v47 = vmul.f32 %v379_v46, %v301_v45  ;;  %vm309_vm12 = vweird.f32 %v379_v46 }
 0x529   :  { %vm310_vm14 = vmor %vm308_vm13, %vm309_vm12 }
 0x52a   :  { %v304_v48 = vmul.f32 %v379_v46, %v303_v47 }
 0x52c   :  { %v305_v49 = vmul.f32 0.5, %v304_v48 }
 0x52e   :  { %v306_v50 = vsub.f32 1.5, %v305_v49 }
 0x530   :  { %v307_v51 = vmul.f32 %v379_v46, %v306_v50 }
 0x532   :  { %v311_v53 = vsel %vm310_vm14, %v379_v46, %v307_v51 }
 0x533   :  { %313 = vrot.lane.b32.xlu1 %v311_v53, %s400_s1 }
 0x5a5   :  { %v314_v52 = vpop.permute.xlu1 %313 }
 0x5a6   :  { %v316_v57 = vmul.f32 %v314_v52, %v426_v1 }
 0x5a8   :  { %319 = vperm.xlu1 %374, %v316_v57  }
 0x61a   :  { %v320_v58 = vpop.permute.xlu1 %319 }
 0x61b   :  { %v322_v60 = vmul.f32 %v320_v58, %v291_v37  ;;  %v323_v55 = vmul.f32 %v320_v58, %v292_v38 }
 0x61d   :  { %v328_v61 = vadd.f32 %v326_v59, %v322_v60  ;;  %v329_v62 = vadd.f32 %v326_v59, %v323_v55 }
 0x61f   :  { %330 = vst [vmem:[%s587_s3] sm:$0xff] %v328_v61 }
 0x620   :  { %331 = vst [vmem:[%s587_s3 + $0x8] sm:$0xff] %v329_v62 }

</bundles_post_ra>
